<compile_context>
chip_gen: v6e
topology: v6e:2x2x1
jax: 0.10.0
libtpu: 0.0.40
codegen_flags: <defaults>
</compile_context>

<pallas_src>
import jax
import jax.numpy as jnp
from jax.experimental import pallas as pl
from jax.experimental.pallas import tpu as pltpu


def _round_up(x, m):
    return (x + m - 1) // m * m


def _vmem_bytes(tm, k_pad, n_pad, out_itemsize):
    # Double-buffered x and out tiles + resident weight + bias.
    x_b = 2 * tm * k_pad * 2            # bf16 activations
    o_b = 2 * tm * n_pad * out_itemsize
    w_b = k_pad * n_pad * 2             # bf16 weight, single copy (constant index)
    b_b = n_pad * 4
    return x_b + o_b + w_b + b_b


def _patch_proj_kernel(x_ref, w_ref, b_ref, o_ref):
    # x_ref: (TM, K_pad) bf16 flattened patch rows
    # w_ref: (K_pad, N_pad) bf16 projection weight (VMEM-resident, DMA'd once)
    # b_ref: (1, N_pad) f32 bias (VMEM-resident)
    # o_ref: (TM, N_pad) output tile (x.dtype)
    acc = jnp.dot(x_ref[...], w_ref[...], preferred_element_type=jnp.float32)
    o_ref[...] = (acc + b_ref[...]).astype(o_ref.dtype)


def patch_embedding(x, weight, bias, patch_size):
    """
    x:      (B, C, H, W)          NCHW, PyTorch convention
    weight: (embed_dim, C, P, P)  Conv2d weight, PyTorch convention
    bias:   (embed_dim,)
    returns (B, n_patches, embed_dim) in x.dtype
    """
    B, C, H, W = x.shape
    P = patch_size
    assert H % P == 0 and W % P == 0, "img_size must be divisible by patch_size"
    E = weight.shape[0]
    hp, wp = H // P, W // P
    n_patches = hp * wp
    out_dtype = x.dtype
    out_itemsize = jnp.dtype(out_dtype).itemsize

    # --- glue: patch extraction + bf16 cast (fused by XLA into one pass) -----
    xp = x.reshape(B, C, hp, P, wp, P)
    xp = jnp.transpose(xp, (0, 2, 4, 1, 3, 5))
    xp = xp.reshape(B * n_patches, C * P * P).astype(jnp.bfloat16)

    w_mat = weight.reshape(E, C * P * P).T.astype(jnp.bfloat16)  # (K, E)
    b_mat = bias.reshape(1, E).astype(jnp.float32)

    M, K = xp.shape
    N = E

    # --- pad to MXU / lane friendly sizes (zero padding is exact) ------------
    K_pad = _round_up(K, 256)
    N_pad = _round_up(N, 256)

    VMEM_BUDGET = 12 * 1024 * 1024  # comfortably under v5e's 16 MiB scoped default

    if M <= 256:
        TM = _round_up(M, 16)  # bf16 packs 16 rows per vreg
    else:
        TM = 1024
        while TM > 256 and _vmem_bytes(TM, K_pad, N_pad, out_itemsize) > VMEM_BUDGET:
            TM //= 2
        # Keep at least 2 grid steps so both v7x TensorCores get work.
        while TM > 256 and _round_up(M, TM) < 2 * TM:
            TM //= 2
    M_pad = _round_up(M, TM)

    xp_p = jnp.pad(xp, ((0, M_pad - M), (0, K_pad - K)))
    w_p = jnp.pad(w_mat, ((0, K_pad - K), (0, N_pad - N)))
    b_p = jnp.pad(b_mat, ((0, 0), (0, N_pad - N)))

    grid = (M_pad // TM,)

    # Only raise the scoped VMEM limit if we actually need more than the
    # conservative default; cap well below v7x's 64 MiB physical VMEM.
    vmem_est = _vmem_bytes(TM, K_pad, N_pad, out_itemsize)
    cp_kwargs = {"dimension_semantics": ("parallel",)}
    if vmem_est > VMEM_BUDGET:
        cp_kwargs["vmem_limit_bytes"] = min(
            int(vmem_est * 1.25) + (2 << 20), 48 * 1024 * 1024
        )

    out = pl.pallas_call(
        _patch_proj_kernel,
        out_shape=jax.ShapeDtypeStruct((M_pad, N_pad), out_dtype),
        grid=grid,
        in_specs=[
            pl.BlockSpec((TM, K_pad), lambda i: (i, 0)),
            pl.BlockSpec((K_pad, N_pad), lambda i: (0, 0)),  # resident weight
            pl.BlockSpec((1, N_pad), lambda i: (0, 0)),      # resident bias
        ],
        out_specs=pl.BlockSpec((TM, N_pad), lambda i: (i, 0)),
        compiler_params=pltpu.CompilerParams(**cp_kwargs),
    )(xp_p, w_p, b_p)

    out = out[:M, :N]
    return out.reshape(B, n_patches, E)


if __name__ == "__main__":
    # Small shapes consistent with the module.
    img_size = 16
    patch_size = 4
    in_channels = 4
    embed_dim = 32
    batch = 2

    key = jax.random.PRNGKey(0)
    kx, kw, kb = jax.random.split(key, 3)

    x = jax.random.normal(kx, (batch, in_channels, img_size, img_size), jnp.float32)
    weight = jax.random.normal(
        kw, (embed_dim, in_channels, patch_size, patch_size), jnp.float32
    ) * 0.02
    bias = jax.random.normal(kb, (embed_dim,), jnp.float32) * 0.02

    out = patch_embedding(x, weight, bias, patch_size)
    out = jax.block_until_ready(out)

    # Reference: plain-JAX strided conv (same semantics as nn.Conv2d), f32.
    ref = jax.lax.conv_general_dilated(
        x, weight,
        window_strides=(patch_size, patch_size),
        padding="VALID",
        dimension_numbers=("NCHW", "OIHW", "NCHW"),
    ) + bias.reshape(1, embed_dim, 1, 1)
    ref = ref.reshape(batch, embed_dim, -1).transpose(0, 2, 1)

    n_patches = (img_size // patch_size) ** 2
    assert out.shape == (batch, n_patches, embed_dim)
    # bf16 operands with f32 accumulation -> small rounding vs. f32 reference.
    assert jnp.allclose(out, ref, atol=2e-2, rtol=2e-2), (
        float(jnp.max(jnp.abs(out - ref)))
    )

    print("KERNEL_OK")
</pallas_src>

<mosaic_0001>
module attributes {stable_mosaic.version = 11 : i64} {
  func.func @_patch_proj_kernel(%arg0: i32, %arg1: memref<32x256xbf16, #tpu.memory_space<vmem>>, %arg2: memref<256x256xbf16, #tpu.memory_space<vmem>>, %arg3: memref<1x256xf32, #tpu.memory_space<vmem>>, %arg4: memref<32x256xf32, #tpu.memory_space<vmem>>) attributes {dimension_semantics = [#tpu.dimension_semantics<parallel>], iteration_bounds = array<i64: 1>, scalar_prefetch = 0 : i64, scratch_operands = 0 : i64, tpu.core_type = #tpu.core_type<tc>, window_params = [{transform_indices = @transform_0, window_bounds = array<i64: 32, 256>}, {pipeline_mode = #tpu.pipeline_mode<synchronous>, transform_indices = @transform_1, window_bounds = array<i64: 256, 256>}, {pipeline_mode = #tpu.pipeline_mode<synchronous>, transform_indices = @transform_2, window_bounds = array<i64: 1, 256>}, {transform_indices = @transform_3, window_bounds = array<i64: 32, 256>}]} {
    %c0 = arith.constant 0 : index
    %c0_0 = arith.constant 0 : index
    %0 = vector.load %arg1[%c0, %c0_0] : memref<32x256xbf16, #tpu.memory_space<vmem>>, vector<32x256xbf16>
    %c0_1 = arith.constant 0 : index
    %c0_2 = arith.constant 0 : index
    %1 = vector.load %arg2[%c0_1, %c0_2] : memref<256x256xbf16, #tpu.memory_space<vmem>>, vector<256x256xbf16>
    %cst = arith.constant dense<0.000000e+00> : vector<32x256xf32>
    %2 = tpu.matmul %0, %1, %cst {dimension_numbers = #tpu.dot_dimension_numbers<[1], [0], [0], [1], [0, 0, 1, 1], [], []>} : vector<32x256xbf16>, vector<256x256xbf16>, vector<32x256xf32> -> vector<32x256xf32>
    %c0_3 = arith.constant 0 : index
    %c0_4 = arith.constant 0 : index
    %3 = vector.load %arg3[%c0_3, %c0_4] : memref<1x256xf32, #tpu.memory_space<vmem>>, vector<1x256xf32>
    %4 = vector.broadcast %3 : vector<1x256xf32> to vector<32x256xf32>
    %5 = arith.addf %2, %4 : vector<32x256xf32>
    %c0_5 = arith.constant 0 : index
    %c0_6 = arith.constant 0 : index
    %6 = vector.load %arg4[%c0_5, %c0_6] : memref<32x256xf32, #tpu.memory_space<vmem>>, vector<32x256xf32>
    tpu.vector_store %arg4[%c0_5, %c0_6], %5 {strides = array<i32>} : memref<32x256xf32, #tpu.memory_space<vmem>>, vector<32x256xf32>,
    return
  }
  func.func @transform_0(%arg0: i32) -> (i32, i32) {
    %c0_i32 = arith.constant 0 : i32
    %c0_i32_0 = arith.constant 0 : i32
    return %arg0, %c0_i32 : i32, i32
  }
  func.func @transform_1(%arg0: i32) -> (i32, i32) {
    %c0_i32 = arith.constant 0 : i32
    %c0_i32_0 = arith.constant 0 : i32
    %c0_i32_1 = arith.constant 0 : i32
    return %c0_i32, %c0_i32_0 : i32, i32
  }
  func.func @transform_2(%arg0: i32) -> (i32, i32) {
    %c0_i32 = arith.constant 0 : i32
    %c0_i32_0 = arith.constant 0 : i32
    %c0_i32_1 = arith.constant 0 : i32
    return %c0_i32, %c0_i32_0 : i32, i32
  }
  func.func @transform_3(%arg0: i32) -> (i32, i32) {
    %c0_i32 = arith.constant 0 : i32
    %c0_i32_0 = arith.constant 0 : i32
    return %arg0, %c0_i32 : i32, i32
  }
}

</mosaic_0001>

<bundles_post_ra>
// kernel: tpu_custom_call.1
= control target key start
LH: loop header
LB: loop body
LE: loop exit
PB: predicated region body
PF: predicated region fallthrough
CT: control target
= control target key end

     0   :  { %8 = vsyncpa [#allocation3], 0  ;;  %s584_s0 = inlined_call_operand.hbm [shape: bf16[32,256], index: 0, kind: input, shape index: {}]   ;;  %s585_s1 = inlined_call_operand.hbm [shape: bf16[256,256], index: 1, kind: input, shape index: {}]   ;;  %s586_s2 = inlined_call_operand.vmem [shape: f32[1,256], index: 2, kind: input, shape index: {}]   ;;  %s587_s3 = inlined_call_operand.hbm [shape: f32[32,256], index: 3, kind: output, shape index: {}]  }
   0x1   :  { %9 = vsyncpa [#allocation6], 0 }
   0x2   :  { %10 = vsyncpa [#allocation4], 0  ;;  %s545_s12 = smov [#allocation2]  }
   0x3   :  { %s16_s13 = sshll.u32 %s545_s12, 4  ;;  %s17_s13 = int_to_ptr.vmem [resolvable:$true] %s16_s13 }
   0x4   :  { %s487_s14 = scalar_lea.vmem %s17_s13, 512  ;;  %p492_p1 = scmp.lt.s32.totalorder %s17_s13, %s17_s13 }
   0x5   :  { %p488_p0 = scmp.ne.s32.totalorder %s17_s13, %s487_s14  ;;  %p493_p2 = scmp.lt.s32.totalorder %s487_s14, %s487_s14 }
   0x7   :  { %p494_p3 = por %p493_p2, %p492_p1 }
   0x9   :  { %p495_p4 = pnand %p494_p3, %p488_p0 }
   0xb   :  { %498 = shalt.err (!%p495_p4)
}
   0xc   :  { %s546_s15 = smov 128   ;;  %s547_s16 = smov 8  }
   0xd   :  { %22 = dma.hbm_to_vmem [thread:$0]  %s584_s0, 512, %s17_s13, [#allocation3], %s546_s15, %s546_s15, %s547_s16  }
   0xe   :  { %s548_s19 = smov [#allocation5]  }
   0xf   :  { %s28_s20 = sshll.u32 %s548_s19, 4  ;;  %s29_s20 = int_to_ptr.vmem [resolvable:$true] %s28_s20 }
  0x10   :  { %s507_s21 = scalar_lea.vmem %s29_s20, 4096  ;;  %p512_p6 = scmp.lt.s32.totalorder %s29_s20, %s29_s20 }
  0x11   :  { %p508_p5 = scmp.ne.s32.totalorder %s29_s20, %s507_s21  ;;  %p513_p7 = scmp.lt.s32.totalorder %s507_s21, %s507_s21 }
  0x13   :  { %p514_p8 = por %p513_p7, %p512_p6 }
  0x15   :  { %p515_p9 = pnand %p514_p8, %p508_p5 }
  0x17   :  { %518 = shalt.err (!%p515_p9)
}
  0x18   :  { %34 = dma.hbm_to_vmem [thread:$0]  %s585_s1, 4096, %s29_s20, [#allocation6], %s546_s15, %s546_s15, %s547_s16  }
  0x19   :  { %539 = dma.done.wait [#allocation3], 512  }
  0x1a   :  { %540 = vsyncadd [#allocation3], 4294966784 }
  0x1b   :  { %541 = dma.done.wait [#allocation6], 4096  }
  0x1c   :  { %542 = vsyncadd [#allocation6], 4294963200  ;;  %v425_v0 = vld [vmem:[#allocation5 + $0x74] ss:$8 sps:$4 sm:$0xff]   ;;  %v427_v1 = vld [vmem:[#allocation5 + $0x70] ss:$8 sps:$4 sm:$0xff]   ;;  %v81_v36 = vlaneseq }
  0x1d   :  { %271 = vmatprep.subr.bf16.mxu0 %v425_v0  ;;  %386 = vmatprep.subr.bf16.mxu1 %v425_v0  ;;  %v428_v2 = vld [vmem:[#allocation5 + $0x64] ss:$8 sps:$4 sm:$0xff]   ;;  %v430_v3 = vld [vmem:[#allocation5 + $0x60] ss:$8 sps:$4 sm:$0xff]   ;;  %v431_v4 = vld [vmem:[#allocation5 + $0x54] ss:$8 sps:$4 sm:$0xff]  }
  0x1e   :  { %272 = vmatpush1.bf16.msra.mxu0 %v427_v1  ;;  %402 = vmatpush1.bf16.msra.mxu1 %v427_v1  ;;  %v433_v5 = vld [vmem:[#allocation5 + $0x50] ss:$8 sps:$4 sm:$0xff]   ;;  %v434_v6 = vld [vmem:[#allocation5 + $0x44] ss:$8 sps:$4 sm:$0xff]   ;;  %v436_v7 = vld [vmem:[#allocation5 + $0x40] ss:$8 sps:$4 sm:$0xff]  }
  0x1f   :  { %273 = vmatprep.subr.bf16.mxu0 %v428_v2  ;;  %387 = vmatprep.subr.bf16.mxu1 %v428_v2  ;;  %v437_v8 = vld [vmem:[#allocation5 + $0x34] ss:$8 sps:$4 sm:$0xff]   ;;  %v439_v9 = vld [vmem:[#allocation5 + $0x30] ss:$8 sps:$4 sm:$0xff]   ;;  %v440_v10 = vld [vmem:[#allocation5 + $0x24] ss:$8 sps:$4 sm:$0xff]  }
  0x20   :  { %v442_v11 = vld [vmem:[#allocation5 + $0x20] ss:$8 sps:$4 sm:$0xff]   ;;  %v443_v12 = vld [vmem:[#allocation5 + $0x14] ss:$8 sps:$4 sm:$0xff]   ;;  %v475_v13 = vld [vmem:[#allocation2 + $0x4] ss:$8 sps:$4 sm:$0xff]  }
  0x21   :  { %v445_v14 = vld [vmem:[#allocation5 + $0x10] ss:$8 sps:$4 sm:$0xff]   ;;  %v478_v15 = vld [vmem:[#allocation2 + $0x14] ss:$8 sps:$4 sm:$0xff]   ;;  %v446_v16 = vld [vmem:[#allocation5 + $0x4] ss:$8 sps:$4 sm:$0xff]   ;;  %303 = vmatprep.mubr.bf16.mxu0 %v475_v13 }
  0x22   :  { %274 = vmatpush1.bf16.msra.mxu0 %v430_v3  ;;  %403 = vmatpush1.bf16.msra.mxu1 %v430_v3  ;;  %v448_v17 = vld [vmem:[#allocation5] ss:$8 sps:$4 sm:$0xff]   ;;  %v449_v18 = vld [vmem:[#allocation5 + $0xf4] ss:$8 sps:$4 sm:$0xff]   ;;  %v451_v19 = vld [vmem:[#allocation5 + $0xf0] ss:$8 sps:$4 sm:$0xff]  }
  0x23   :  { %275 = vmatprep.subr.bf16.mxu0 %v431_v4  ;;  %388 = vmatprep.subr.bf16.mxu1 %v431_v4  ;;  %v452_v20 = vld [vmem:[#allocation5 + $0xe4] ss:$8 sps:$4 sm:$0xff]   ;;  %v454_v21 = vld [vmem:[#allocation5 + $0xe0] ss:$8 sps:$4 sm:$0xff]   ;;  %v455_v22 = vld [vmem:[#allocation5 + $0xd4] ss:$8 sps:$4 sm:$0xff]  }
  0x24   :  { %313 = vmatprep.mubr.bf16.mxu1 %v478_v15  ;;  %v457_v23 = vld [vmem:[#allocation5 + $0xd0] ss:$8 sps:$4 sm:$0xff]   ;;  %v458_v24 = vld [vmem:[#allocation5 + $0xc4] ss:$8 sps:$4 sm:$0xff]   ;;  %v460_v25 = vld [vmem:[#allocation5 + $0xc0] ss:$8 sps:$4 sm:$0xff]  }
  0x25   :  { %v461_v26 = vld [vmem:[#allocation5 + $0xb4] ss:$8 sps:$4 sm:$0xff]   ;;  %v463_v27 = vld [vmem:[#allocation5 + $0xb0] ss:$8 sps:$4 sm:$0xff]   ;;  %v464_v28 = vld [vmem:[#allocation5 + $0xa4] ss:$8 sps:$4 sm:$0xff]  }
  0x26   :  { %276 = vmatpush1.bf16.msra.mxu0 %v433_v5  ;;  %404 = vmatpush1.bf16.msra.mxu1 %v433_v5  ;;  %v466_v29 = vld [vmem:[#allocation5 + $0xa0] ss:$8 sps:$4 sm:$0xff]   ;;  %v467_v30 = vld [vmem:[#allocation5 + $0x94] ss:$8 sps:$4 sm:$0xff]   ;;  %v469_v31 = vld [vmem:[#allocation5 + $0x90] ss:$8 sps:$4 sm:$0xff]  }
  0x27   :  { %277 = vmatprep.subr.bf16.mxu0 %v434_v6  ;;  %389 = vmatprep.subr.bf16.mxu1 %v434_v6  ;;  %v470_v32 = vld [vmem:[#allocation5 + $0x84] ss:$8 sps:$4 sm:$0xff]   ;;  %v472_v33 = vld [vmem:[#allocation5 + $0x80] ss:$8 sps:$4 sm:$0xff]   ;;  %v476_v35 = vld [vmem:[#allocation2 + $0x10] ss:$8 sps:$4 sm:$0xff]  }
  0x28   :  { %v473_v34 = vld [vmem:[#allocation2] ss:$8 sps:$4 sm:$0xff]   ;;  %v82_v37 = vshrl.u32 %v81_v36, 7  ;;  %s549_s24 = smov [#allocation7]  }
  0x29   :  { %v79_v39 = vld [vmem:[%s586_s2] sm:$0x3]  ;;  %s337_s25 = sshll.u32 %s549_s24, 4  ;;  %s338_s25 = int_to_ptr.vmem [resolvable:$true] %s337_s25 }
  0x2a   :  { %278 = vmatpush1.bf16.msra.mxu0 %v436_v7  ;;  %405 = vmatpush1.bf16.msra.mxu1 %v436_v7  ;;  %v83_v38 = vsub.s32 0, %v82_v37  ;;  %v87_v40 = vsub.s32 1, %v82_v37  ;;  %s519_s2 = scalar_lea.vmem %s338_s25, 1024  ;;  %p524_p11 = scmp.lt.s32.totalorder %s338_s25, %s338_s25 }
  0x2b   :  { %279 = vmatprep.subr.bf16.mxu0 %v437_v8  ;;  %390 = vmatprep.subr.bf16.mxu1 %v437_v8  ;;  %p520_p10 = scmp.ne.s32.totalorder %s338_s25, %s519_s2  ;;  %p525_p12 = scmp.lt.s32.totalorder %s519_s2, %s519_s2 }
  0x2c   :  { %v84_v41 = vrot.slane %v79_v39, %v83_v38  ;;  %v88_v42 = vrot.slane %v79_v39, %v87_v40 }
  0x2d   :  { %p526_p13 = por %p525_p12, %p524_p11 }
  0x2e   :  { %280 = vmatpush1.bf16.msra.mxu0 %v439_v9  ;;  %406 = vmatpush1.bf16.msra.mxu1 %v439_v9 }
  0x2f   :  { %281 = vmatprep.subr.bf16.mxu0 %v440_v10  ;;  %391 = vmatprep.subr.bf16.mxu1 %v440_v10  ;;  %p527_p0 = pnand %p526_p13, %p520_p10 }
  0x32   :  { %282 = vmatpush1.bf16.msra.mxu0 %v442_v11  ;;  %407 = vmatpush1.bf16.msra.mxu1 %v442_v11 }
  0x33   :  { %283 = vmatprep.subr.bf16.mxu0 %v443_v12  ;;  %392 = vmatprep.subr.bf16.mxu1 %v443_v12 }
  0x36   :  { %284 = vmatpush1.bf16.msra.mxu0 %v445_v14  ;;  %408 = vmatpush1.bf16.msra.mxu1 %v445_v14 }
  0x37   :  { %285 = vmatprep.subr.bf16.mxu0 %v446_v16  ;;  %393 = vmatprep.subr.bf16.mxu1 %v446_v16 }
  0x3a   :  { %286 = vmatpush1.bf16.msra.mxu0 %v448_v17  ;;  %409 = vmatpush1.bf16.msra.mxu1 %v448_v17 }
  0x3b   :  { %287 = vmatprep.subr.bf16.mxu0 %v449_v18  ;;  %394 = vmatprep.subr.bf16.mxu1 %v449_v18 }
  0x3e   :  { %288 = vmatpush2.bf16.msra.mxu0 %v451_v19  ;;  %410 = vmatpush2.bf16.msra.mxu1 %v451_v19 }
  0x3f   :  { %289 = vmatprep.subr.bf16.mxu0 %v452_v20  ;;  %395 = vmatprep.subr.bf16.mxu1 %v452_v20 }
  0x42   :  { %290 = vmatpush2.bf16.msra.mxu0 %v454_v21  ;;  %411 = vmatpush2.bf16.msra.mxu1 %v454_v21 }
  0x43   :  { %291 = vmatprep.subr.bf16.mxu0 %v455_v22  ;;  %396 = vmatprep.subr.bf16.mxu1 %v455_v22 }
  0x46   :  { %292 = vmatpush2.bf16.msra.mxu0 %v457_v23  ;;  %412 = vmatpush2.bf16.msra.mxu1 %v457_v23 }
  0x47   :  { %293 = vmatprep.subr.bf16.mxu0 %v458_v24  ;;  %397 = vmatprep.subr.bf16.mxu1 %v458_v24 }
  0x4a   :  { %294 = vmatpush2.bf16.msra.mxu0 %v460_v25  ;;  %413 = vmatpush2.bf16.msra.mxu1 %v460_v25 }
  0x4b   :  { %295 = vmatprep.subr.bf16.mxu0 %v461_v26  ;;  %398 = vmatprep.subr.bf16.mxu1 %v461_v26 }
  0x4e   :  { %296 = vmatpush2.bf16.msra.mxu0 %v463_v27  ;;  %414 = vmatpush2.bf16.msra.mxu1 %v463_v27 }
  0x4f   :  { %297 = vmatprep.subr.bf16.mxu0 %v464_v28  ;;  %399 = vmatprep.subr.bf16.mxu1 %v464_v28 }
  0x52   :  { %298 = vmatpush2.bf16.msra.mxu0 %v466_v29  ;;  %415 = vmatpush2.bf16.msra.mxu1 %v466_v29 }
  0x53   :  { %299 = vmatprep.subr.bf16.mxu0 %v467_v30  ;;  %400 = vmatprep.subr.bf16.mxu1 %v467_v30 }
  0x56   :  { %300 = vmatpush2.bf16.msra.mxu0 %v469_v31  ;;  %416 = vmatpush2.bf16.msra.mxu1 %v469_v31 }
  0x57   :  { %301 = vmatprep.subr.bf16.mxu0 %v470_v32  ;;  %401 = vmatprep.subr.bf16.mxu1 %v470_v32 }
  0x5a   :  { %302 = vmatpush2.bf16.msra.mxu0 %v472_v33  ;;  %417 = vmatpush2.bf16.msra.mxu1 %v472_v33 }
  0x5d   :  { %304 = vmatmul.mubr.bf16.vlgmr.msra.gmra.mxu0 %v473_v34  ;;  %314 = vmatmul.mubr.bf16.vlgmr.msra.gmra.mxu1 %v476_v35 }
 0x11d   :  { %v305_v43 = vpop.f32.mrf.mxu0  ;;  %v315_v44 = vpop.f32.mrf.mxu1 }
 0x11e   :  { %v306_v45 = vadd.f32 %v305_v43, %v84_v41  ;;  %v316_v46 = vadd.f32 %v315_v44, %v84_v41 }
 0x11f   :  { %v307_v47 = vpop.f32.mrf.mxu0  ;;  %v317_v48 = vpop.f32.mrf.mxu1 }
 0x120   :  { %324 = vst [vmem:[#allocation7] sm:$0xff] %v306_v45  ;;  %328 = vst [vmem:[#allocation7 + $0x20] sm:$0xff] %v316_v46  ;;  %v308_v49 = vadd.f32 %v307_v47, %v88_v42  ;;  %v318_v50 = vadd.f32 %v317_v48, %v88_v42 }
 0x121   :  { %v309_v51 = vpop.f32.mrf.mxu0  ;;  %v319_v52 = vpop.f32.mrf.mxu1 }
 0x122   :  { %325 = vst [vmem:[#allocation7 + $0x8] sm:$0xff] %v308_v49  ;;  %329 = vst [vmem:[#allocation7 + $0x28] sm:$0xff] %v318_v50  ;;  %v310_v53 = vadd.f32 %v309_v51, %v84_v41  ;;  %v320_v54 = vadd.f32 %v319_v52, %v84_v41 }
 0x123   :  { %v311_v55 = vpop.f32.mrf.mxu0  ;;  %v321_v56 = vpop.f32.mrf.mxu1 }
 0x124   :  { %326 = vst [vmem:[#allocation7 + $0x10] sm:$0xff] %v310_v53  ;;  %330 = vst [vmem:[#allocation7 + $0x30] sm:$0xff] %v320_v54  ;;  %v312_v57 = vadd.f32 %v311_v55, %v88_v42  ;;  %v322_v58 = vadd.f32 %v321_v56, %v88_v42 }
 0x126   :  { %327 = vst [vmem:[#allocation7 + $0x18] sm:$0xff] %v312_v57  ;;  %331 = vst [vmem:[#allocation7 + $0x38] sm:$0xff] %v322_v58 }
 0x127   :  { %530 = shalt.err (!%p527_p0)
}
 0x128   :  { %s550_s26 = smov 256   ;;  %s551_s27 = smov 16  }
 0x129   :  { %343 = dma.vmem_to_hbm [thread:$0]  %s338_s25, 1024, %s587_s3, [#allocation4], %s550_s26, %s550_s26, %s551_s27  }
 0x12a   :  { %543 = dma.done.wait [#allocation4], 1024  }
 0x12b   :  { %544 = vsyncadd [#allocation4], 4294966272 }
 0x12c   :  { %347 = vsyncpa [#allocation3], 1 }
 0x12d   :  { %348 = vsyncpa [#allocation6], 1 }
 0x12e   :  { %349 = vsyncpa [#allocation4], 1 }

</bundles_post_ra>
